<compile_context>
chip_gen: v7x
topology: tpu7x:2x2x1
jax: 0.10.0
libtpu: 0.0.40
codegen_flags: <defaults>
</compile_context>

<pallas_src>
import functools

import jax
import jax.numpy as jnp
from jax.experimental import pallas as pl
from jax.experimental.pallas import tpu as pltpu


def _round_up(x, m):
    return ((x + m - 1) // m) * m


def _cdiv(a, b):
    return -(-a // b)


def _vmem_capacity_bytes():
    """Best-effort VMEM capacity query; conservative (v7x-sized) fallback."""
    try:
        return int(pltpu.get_tpu_info().vmem_capacity_bytes)
    except Exception:
        return 64 * 1024 * 1024


def _pool_kernel(x_ref, out_ref, max_acc, sum_acc, *, hw, hw_chunk, inv_hw, ragged):
    k = pl.program_id(1)
    nk = pl.num_programs(1)

    @pl.when(k == 0)
    def _():
        max_acc[...] = jnp.full(max_acc.shape, -jnp.inf, dtype=max_acc.dtype)
        sum_acc[...] = jnp.zeros(sum_acc.shape, dtype=sum_acc.dtype)

    x = x_ref[...]

    def accumulate(x_max, x_sum_f32):
        # Max on the native dtype (exact); only the (tr, 1) partial is cast to f32.
        max_acc[...] = jnp.maximum(
            max_acc[...],
            jnp.max(x_max, axis=-1, keepdims=True).astype(jnp.float32),
        )
        sum_acc[...] = sum_acc[...] + jnp.sum(x_sum_f32, axis=-1, keepdims=True)

    if ragged:
        # Only the last hw chunk carries implicit (garbage) block padding.
        is_last = k == nk - 1

        @pl.when(jnp.logical_not(is_last))
        def _():
            accumulate(x, x.astype(jnp.float32))

        @pl.when(is_last)
        def _():
            # Validity depends only on the lane index -> keep the mask (1, hw_chunk).
            lane = jax.lax.broadcasted_iota(jnp.int32, (1, x.shape[1]), 1)
            valid = (lane + k * hw_chunk) < hw
            neg_inf = jnp.array(-jnp.inf, dtype=x.dtype)
            accumulate(
                jnp.where(valid, x, neg_inf),
                jnp.where(valid, x.astype(jnp.float32), 0.0),
            )
    else:
        accumulate(x, x.astype(jnp.float32))

    @pl.when(k == nk - 1)
    def _():
        out_ref[:, 0:1] = max_acc[...].astype(out_ref.dtype)
        out_ref[:, 1:2] = (sum_acc[...] * inv_hw).astype(out_ref.dtype)


def adaptive_concat_pool2d(x):
    """x: (N, C, H, W) -> (N, 2*C, 1, 1), matching AdaptiveConcatPool2d(sz=None)."""
    N, C, H, W = x.shape
    rows = N * C
    hw = H * W
    itemsize = int(jnp.dtype(x.dtype).itemsize)

    # Sublane packing multiple: 8 (f32), 16 (bf16), 32 (int8/fp8).
    sub_mult = max(8, 32 // max(itemsize, 1))

    # Lane (H*W) chunking: whole row if small; otherwise balanced chunks rounded
    # up to 128 lanes so the trailing chunk is not mostly padding.
    HW_CHUNK_MAX = 4096
    if hw <= HW_CHUNK_MAX:
        hw_chunk = hw
    else:
        n_chunks = _cdiv(hw, HW_CHUNK_MAX)
        hw_chunk = _round_up(_cdiv(hw, n_chunks), 128)
    ragged = (hw % hw_chunk) != 0
    grid_k = _cdiv(hw, hw_chunk)

    lane_padded = _round_up(hw_chunk, 128)

    # Generation-dependent VMEM budget: big blocks on 128 MiB v5e/v6e, smaller on v7x.
    vmem_cap = _vmem_capacity_bytes()
    big_vmem = vmem_cap >= 96 * 1024 * 1024
    vmem_limit = (64 if big_vmem else 32) * 1024 * 1024
    budget = (vmem_limit * 3) // 4

    # Per-row VMEM: double-buffered input (native dtype, lane-padded) plus f32
    # working copy / mask headroom for the reduction temporaries.
    per_row = lane_padded * (2 * itemsize + 8)
    tr = max(sub_mult, (budget // per_row) // sub_mult * sub_mult)
    tr = min(tr, _round_up(rows, sub_mult))

    # v7x megacore: ensure the "parallel" row axis has >= 2 blocks when rows
    # allow, so both TensorCores get work (one extra grid step on v5e/v6e: noise).
    if rows >= 2 * sub_mult and _cdiv(rows, tr) < 2:
        tr = _round_up(_cdiv(rows, 2), sub_mult)

    grid_i = _cdiv(rows, tr)

    x2d = x.reshape(rows, hw)

    kernel = functools.partial(
        _pool_kernel, hw=hw, hw_chunk=hw_chunk, inv_hw=1.0 / float(hw), ragged=ragged
    )

    out2 = pl.pallas_call(
        kernel,
        out_shape=jax.ShapeDtypeStruct((rows, 2), x.dtype),
        grid_spec=pltpu.PrefetchScalarGridSpec(
            num_scalar_prefetch=0,
            grid=(grid_i, grid_k),
            in_specs=[pl.BlockSpec((tr, hw_chunk), lambda i, k: (i, k))],
            out_specs=pl.BlockSpec((tr, 2), lambda i, k: (i, 0)),
            scratch_shapes=[
                pltpu.VMEM((tr, 1), jnp.float32),   # running max
                pltpu.VMEM((tr, 1), jnp.float32),   # running sum
            ],
        ),
        compiler_params=pltpu.CompilerParams(
            dimension_semantics=("parallel", "arbitrary"),
            vmem_limit_bytes=vmem_limit,
        ),
    )(x2d)

    max_pool = out2[:, 0].reshape(N, C, 1, 1)
    avg_pool = out2[:, 1].reshape(N, C, 1, 1)
    # Max-pool channels first, then avg-pool channels (matches torch.cat order).
    return jnp.concatenate([max_pool, avg_pool], axis=1)


def _reference(x):
    return jnp.concatenate(
        [
            jnp.max(x, axis=(2, 3), keepdims=True),
            jnp.mean(x, axis=(2, 3), keepdims=True),
        ],
        axis=1,
    )


if __name__ == "__main__":
    key = jax.random.PRNGKey(0)

    # Primary small example consistent with the module: (N=2, C=4, H=W=16).
    x = jax.random.normal(key, (2, 4, 16, 16), dtype=jnp.float32)
    out = jax.block_until_ready(adaptive_concat_pool2d(x))
    ref = _reference(x)
    assert out.shape == (2, 8, 1, 1), out.shape
    assert jnp.allclose(out, ref, atol=1e-5, rtol=1e-5), "mismatch vs reference (small)"

    # Second check: exercises the chunked/ragged hw path with in-kernel masking
    # (H*W = 4900 -> 2 x 2560 chunks, last chunk partially out-of-bounds) and a
    # partial row block (N*C = 3 < 8). All-negative input catches any unmasked
    # garbage block padding leaking into the max.
    x2 = -jnp.abs(
        jax.random.normal(jax.random.PRNGKey(1), (1, 3, 70, 70), dtype=jnp.float32)
    )
    out2 = jax.block_until_ready(adaptive_concat_pool2d(x2))
    ref2 = _reference(x2)
    assert out2.shape == (1, 6, 1, 1), out2.shape
    assert jnp.allclose(out2, ref2, atol=1e-5, rtol=1e-5), "mismatch vs reference (chunked)"

    print("KERNEL_OK")
</pallas_src>

<mosaic_0001>
module attributes {stable_mosaic.version = 11 : i64} {
  func.func @_pool_kernel(%arg0: i32, %arg1: i32, %arg2: memref<8x256xf32, #tpu.memory_space<vmem>>, %arg3: memref<8x2xf32, #tpu.memory_space<vmem>>, %arg4: memref<8x1xf32, #tpu.memory_space<vmem>>, %arg5: memref<8x1xf32, #tpu.memory_space<vmem>>) attributes {dimension_semantics = [#tpu.dimension_semantics<parallel>, #tpu.dimension_semantics<arbitrary>], iteration_bounds = array<i64: 1, 1>, scalar_prefetch = 0 : i64, scratch_operands = 2 : i64, tpu.core_type = #tpu.core_type<tc>, window_params = [{transform_indices = @transform_0, window_bounds = array<i64: 8, 256>}, {transform_indices = @transform_1, window_bounds = array<i64: 8, 2>}]} {
    %c0_i32 = arith.constant 0 : i32
    %0 = arith.cmpi eq, %arg1, %c0_i32 : i32
    %1 = arith.extui %0 : i1 to i32
    %c0_i32_0 = arith.constant 0 : i32
    %2 = arith.cmpi ne, %1, %c0_i32_0 : i32
    scf.if %2 {
      %cst_13 = arith.constant 0xFF800000 : f32
      %17 = vector.broadcast %cst_13 : f32 to vector<8x1xf32>
      %c0_14 = arith.constant 0 : index
      %c0_15 = arith.constant 0 : index
      %18 = vector.load %arg4[%c0_14, %c0_15] : memref<8x1xf32, #tpu.memory_space<vmem>>, vector<8x1xf32>
      tpu.vector_store %arg4[%c0_14, %c0_15], %17 {strides = array<i32>} : memref<8x1xf32, #tpu.memory_space<vmem>>, vector<8x1xf32>,
      %cst_16 = arith.constant 0.000000e+00 : f32
      %19 = vector.broadcast %cst_16 : f32 to vector<8x1xf32>
      %c0_17 = arith.constant 0 : index
      %c0_18 = arith.constant 0 : index
      %20 = vector.load %arg5[%c0_17, %c0_18] : memref<8x1xf32, #tpu.memory_space<vmem>>, vector<8x1xf32>
      tpu.vector_store %arg5[%c0_17, %c0_18], %19 {strides = array<i32>} : memref<8x1xf32, #tpu.memory_space<vmem>>, vector<8x1xf32>,
    } else {
    }
    %c0 = arith.constant 0 : index
    %c0_1 = arith.constant 0 : index
    %3 = vector.load %arg2[%c0, %c0_1] : memref<8x256xf32, #tpu.memory_space<vmem>>, vector<8x256xf32>
    %c0_2 = arith.constant 0 : index
    %c0_3 = arith.constant 0 : index
    %4 = vector.load %arg4[%c0_2, %c0_3] : memref<8x1xf32, #tpu.memory_space<vmem>>, vector<8x1xf32>
    %cst = arith.constant dense<0xFF800000> : vector<8xf32>
    %5 = vector.multi_reduction <maximumf>, %3, %cst [1] : vector<8x256xf32> to vector<8xf32>
    %6 = vector.shape_cast %5 : vector<8xf32> to vector<8x1xf32>
    %7 = arith.maximumf %4, %6 : vector<8x1xf32>
    %c0_4 = arith.constant 0 : index
    %c0_5 = arith.constant 0 : index
    %8 = vector.load %arg4[%c0_4, %c0_5] : memref<8x1xf32, #tpu.memory_space<vmem>>, vector<8x1xf32>
    tpu.vector_store %arg4[%c0_4, %c0_5], %7 {strides = array<i32>} : memref<8x1xf32, #tpu.memory_space<vmem>>, vector<8x1xf32>,
    %c0_6 = arith.constant 0 : index
    %c0_7 = arith.constant 0 : index
    %9 = vector.load %arg5[%c0_6, %c0_7] : memref<8x1xf32, #tpu.memory_space<vmem>>, vector<8x1xf32>
    %cst_8 = arith.constant dense<0.000000e+00> : vector<8xf32>
    %10 = vector.multi_reduction <add>, %3, %cst_8 [1] : vector<8x256xf32> to vector<8xf32>
    %11 = vector.shape_cast %10 : vector<8xf32> to vector<8x1xf32>
    %12 = arith.addf %9, %11 : vector<8x1xf32>
    %c0_9 = arith.constant 0 : index
    %c0_10 = arith.constant 0 : index
    %13 = vector.load %arg5[%c0_9, %c0_10] : memref<8x1xf32, #tpu.memory_space<vmem>>, vector<8x1xf32>
    tpu.vector_store %arg5[%c0_9, %c0_10], %12 {strides = array<i32>} : memref<8x1xf32, #tpu.memory_space<vmem>>, vector<8x1xf32>,
    %c0_i32_11 = arith.constant 0 : i32
    %14 = arith.cmpi eq, %arg1, %c0_i32_11 : i32
    %15 = arith.extui %14 : i1 to i32
    %c0_i32_12 = arith.constant 0 : i32
    %16 = arith.cmpi ne, %15, %c0_i32_12 : i32
    scf.if %16 {
      %c0_13 = arith.constant 0 : index
      %c0_14 = arith.constant 0 : index
      %17 = vector.load %arg4[%c0_13, %c0_14] : memref<8x1xf32, #tpu.memory_space<vmem>>, vector<8x1xf32>
      %c0_15 = arith.constant 0 : index
      %c0_16 = arith.constant 0 : index
      %18 = vector.load %arg3[%c0_15, %c0_16] : memref<8x2xf32, #tpu.memory_space<vmem>>, vector<8x1xf32>
      tpu.vector_store %arg3[%c0_15, %c0_16], %17 {strides = array<i32>} : memref<8x2xf32, #tpu.memory_space<vmem>>, vector<8x1xf32>,
      %c0_17 = arith.constant 0 : index
      %c0_18 = arith.constant 0 : index
      %19 = vector.load %arg5[%c0_17, %c0_18] : memref<8x1xf32, #tpu.memory_space<vmem>>, vector<8x1xf32>
      %cst_19 = arith.constant 3.906250e-03 : f32
      %20 = vector.broadcast %cst_19 : f32 to vector<8x1xf32>
      %21 = arith.mulf %19, %20 : vector<8x1xf32>
      %c0_20 = arith.constant 0 : index
      %c1 = arith.constant 1 : index
      %22 = vector.load %arg3[%c0_20, %c1] : memref<8x2xf32, #tpu.memory_space<vmem>>, vector<8x1xf32>
      tpu.vector_store %arg3[%c0_20, %c1], %21 {strides = array<i32>} : memref<8x2xf32, #tpu.memory_space<vmem>>, vector<8x1xf32>,
    } else {
    }
    return
  }
  func.func @transform_0(%arg0: i32, %arg1: i32) -> (i32, i32) {
    %c0_i32 = arith.constant 0 : i32
    return %arg0, %arg1 : i32, i32
  }
  func.func @transform_1(%arg0: i32, %arg1: i32) -> (i32, i32) {
    %c0_i32 = arith.constant 0 : i32
    %c0_i32_0 = arith.constant 0 : i32
    return %arg0, %c0_i32 : i32, i32
  }
}

</mosaic_0001>

<bundles_post_ra>
// kernel: tpu_custom_call.1
= control target key start
LH: loop header
LB: loop body
LE: loop exit
PB: predicated region body
PF: predicated region fallthrough
CT: control target
= control target key end

     0   :  { %6 = vsyncpa [#allocation5], 0  ;;  %s88_s6 = smov [#allocation4]   ;;  %s125_s0 = inlined_call_operand.hbm [shape: f32[8,256], index: 0, kind: input, shape index: {}]   ;;  %s126_s1 = inlined_call_operand.vmem [shape: f32[8,2], index: 1, kind: output, shape index: {}]  }
   0x1   :  { %s13_s7 = sshll.u32 %s88_s6, 4  ;;  %s64_s10 = scalar_lea.hbm %s125_s0, 256  ;;  %s14_s7 = int_to_ptr.vmem [resolvable:$true] %s13_s7 }
   0x2   :  { %p65_p0 = scmp.ne.s32.totalorder %s125_s0, %s64_s10  ;;  %p68_p1 = scmp.lt.u32.totalorder %s64_s10, %s125_s0 }
   0x4   :  { %p70_p2 = pnand %p68_p1, %p65_p0 }
   0x6   :  { %73 = shalt.err (!%p70_p2)
}
   0x7   :  { %s74_s15 = scalar_lea.vmem %s14_s7, 256  ;;  %p79_p4 = scmp.lt.s32.totalorder %s14_s7, %s14_s7 }
   0x8   :  { %p75_p3 = scmp.ne.s32.totalorder %s14_s7, %s74_s15  ;;  %p80_p5 = scmp.lt.s32.totalorder %s74_s15, %s74_s15 }
   0xa   :  { %p81_p6 = por %p80_p5, %p79_p4 }
   0xc   :  { %p82_p7 = pnand %p81_p6, %p75_p3 }
   0xe   :  { %85 = shalt.err (!%p82_p7)
}
   0xf   :  { %16 = dma.hbm_to_vmem [thread:$0]  %s125_s0, 256, %s14_s7, [#allocation5]  }
  0x10   :  { %86 = dma.done.wait [#allocation5], 256  }
  0x11   :  { %87 = vsyncadd [#allocation5], 4294967040  ;;  %vm24_vm0 = vcmask 7168   ;;  %v89_v0 = vmov 0.0   ;;  %v27_v1 = vld [vmem:[#allocation4] sm:$0xff]  ;;  %v28_v2 = vld [vmem:[#allocation4 + $0x8] sm:$0xff] }
  0x12   :  { %26 = vst.msk [vmem:[#allocation3] sm:$0xff] %vm24_vm0, %v89_v0  ;;  %v37_v3 = vadd.f32 %v28_v2, %v27_v1  ;;  %v30_v4 = vmax.f32 %v27_v1, %v28_v2  ;;  %v90_v5 = vmov -inf   ;;  %s91_s0 = smov 1   ;;  %vm53_vm1 = vcmask 15368  }
  0x13   :  { %25 = vst.msk [vmem:[#allocation2] sm:$0xff] %vm24_vm0, %v90_v5 }
  0x14   :  { %38 = vadd.xlane.f32.xlu0 %v37_v3 }
  0x18   :  { %31 = vmax.xlane.f32.xlu0 %v30_v4 }
  0x19   :  { %v36_v6 = vld [vmem:[#allocation3] sm:$0xff] }
  0x1a   :  { %v29_v9 = vld [vmem:[#allocation2] sm:$0xff] }
  0xa1   :  { %v39_v7 = vpop.xlane.xlu0 %38 }
  0xa2   :  { %v40_v8 = vadd.f32 %v39_v7, %v36_v6 }
  0xa4   :  { %41 = vst.msk [vmem:[#allocation3] sm:$0xff] %vm24_vm0, %v40_v8 }
  0xa5   :  { %v32_v10 = vpop.xlane.xlu0 %31 }
  0xa6   :  { %v33_v11 = vmax.f32 %v29_v9, %v32_v10 }
  0xa8   :  { %35 = vst.msk [vmem:[#allocation2] sm:$0xff] %vm24_vm0, %v33_v11 }
  0xab   :  { %v47_v12 = vld [vmem:[#allocation3] sm:$0xff] }
  0xac   :  { %v48_v13 = vmul.f32 0.00390625, %v47_v12 }
  0xae   :  { %50 = vrot.lane.b32.xlu1 %v48_v13, %s91_s0 }
  0xaf   :  { %v45_v14 = vld [vmem:[#allocation2] sm:$0xff] }
  0xb0   :  { %46 = vst.msk [vmem:[%s126_s1] sm:$0xff] %vm24_vm0, %v45_v14 }
 0x120   :  { %v51_v15 = vpop.permute.xlu1 %50 }
 0x121   :  { %54 = vst.msk [vmem:[%s126_s1] sm:$0xff] %vm53_vm1, %v51_v15 }
 0x122   :  { %59 = vsyncpa [#allocation5], 1 }

</bundles_post_ra>
